<compile_context>
chip_gen: v7x
topology: tpu7x:2x2x1
jax: 0.10.0
libtpu: 0.0.40
codegen_flags: <defaults>
</compile_context>

<pallas_src>
import jax
import jax.numpy as jnp
from jax.experimental import pallas as pl
from jax.experimental.pallas import tpu as pltpu

# ----------------------------- config ---------------------------------------
B = 2              # batch
C_IMG = 4          # image channels
H_IMG = W_IMG = 16
C_LAT = 4          # latent channels (VAE: 2x2 stride-2 patch projection)
H_LAT = W_LAT = 8
HW_LAT = H_LAT * W_LAT
SEQ = 8            # text sequence length
D_TXT = 32         # text hidden dim
VOCAB = 32
T_TRAIN = 1000     # scheduler.config.num_train_timesteps
SCALING = 0.18215  # vae.config.scaling_factor
F_TIME = 8         # sinusoidal time-feature half-width


# ----------------- fused noising + unet + per-sample MSE kernel -------------
# Layout: batch packed into lanes.  x is (C_LAT, B*H*W) = (4, 128): sample b
# occupies lanes [b*HW, (b+1)*HW).  Per-sample scalars / conditioning are
# pre-broadcast into that lane layout by the wrapper, so the whole body is
# full-vreg elementwise + two tiny MXU passes, with every intermediate kept
# in VMEM/vregs.
def _fused_kernel(lat_ref, noise_ref, sab_ref, s1m_ref, cond_ref,
                  w1_ref, w2_ref, segmask_ref, loss_ref):
    lat = lat_ref[...]                                   # (C, B*HW)
    noise = noise_ref[...]                               # (C, B*HW)

    # scheduler add_noise: latent*sqrt(ac[t]) + noise*sqrt(1-ac[t])
    noised = lat * sab_ref[...] + noise * s1m_ref[...]   # (1,B*HW) bcast over C

    # synthetic "unet": two 1x1 convs (channel matmuls) with SiLU, conditioned
    # on a per-(sample, channel) bias (time embedding + pooled text).
    h = jnp.dot(w1_ref[...], noised,
                preferred_element_type=jnp.float32) + cond_ref[...]
    h = jax.nn.silu(h)
    pred = jnp.dot(w2_ref[...], h, preferred_element_type=jnp.float32)

    # per-sample MSE vs all_noise[t]: sum over channels (sublanes) then gather
    # each sample's lane segment with a segment-mask matmul -> (1, B).
    d = pred - noise
    d2 = d * d
    row = jnp.sum(d2, axis=0, keepdims=True)             # (1, B*HW)
    per_sample = jnp.dot(row, segmask_ref[...],
                         preferred_element_type=jnp.float32)   # (1, B)
    loss_ref[...] = per_sample * (1.0 / float(C_LAT * H_LAT * W_LAT))


def fused_noise_unet_mse(lat_packed, noise_packed, sab, s1m, cond_packed,
                         w1, w2, seg_mask):
    b = seg_mask.shape[1]
    vmem = pl.BlockSpec(memory_space=pltpu.MemorySpace.VMEM)
    out = pl.pallas_call(
        _fused_kernel,
        in_specs=[vmem] * 8,
        out_specs=vmem,
        out_shape=jax.ShapeDtypeStruct((1, b), jnp.float32),
    )(lat_packed, noise_packed, sab, s1m, cond_packed, w1, w2, seg_mask)
    return out.reshape(b)


# ------------------------------ parameters -----------------------------------
def init_params(key):
    ks = jax.random.split(key, 10)
    s = 0.05
    betas = jnp.linspace(1e-4, 0.02, T_TRAIN, dtype=jnp.float32)
    params = {
        # vae: 2x2 stride-2 "conv" as patch matmul
        "w_vae": s * jax.random.normal(ks[0], (C_IMG * 4, C_LAT), jnp.float32),
        "b_vae": jnp.zeros((C_LAT,), jnp.float32),
        # text encoder
        "tok_emb": s * jax.random.normal(ks[1], (VOCAB, D_TXT), jnp.float32),
        "w_txt": s * jax.random.normal(ks[2], (D_TXT, D_TXT), jnp.float32),
        "b_txt": jnp.zeros((D_TXT,), jnp.float32),
        # unet conditioning projections
        "w_ctx": s * jax.random.normal(ks[3], (D_TXT, C_LAT), jnp.float32),
        "b_ctx": jnp.zeros((C_LAT,), jnp.float32),
        "w_time": s * jax.random.normal(ks[4], (2 * F_TIME, C_LAT), jnp.float32),
        "b_time": jnp.zeros((C_LAT,), jnp.float32),
        # unet main path (two 1x1 convs)
        "w_u1": s * jax.random.normal(ks[5], (C_LAT, C_LAT), jnp.float32),
        "w_u2": s * jax.random.normal(ks[6], (C_LAT, C_LAT), jnp.float32),
        # scheduler + fixed noise bank (torch.manual_seed(0) analogue)
        "all_noise": jax.random.normal(
            ks[7], (T_TRAIN, C_LAT, H_LAT, W_LAT), jnp.float32),
        "alphas_cumprod": jnp.cumprod(1.0 - betas),
    }
    return params


# ------------------------------ forward pass ---------------------------------
def zero_shot_forward(params, images, input_ids, attention_mask):
    b, c, h, w = images.shape

    # ---- VAE encode: latent_dist.mean via 2x2/stride-2 patch projection ----
    # TODO(synk): real SD VAE encoder is replaced by a single patch projection.
    patches = images.reshape(b, c, h // 2, 2, w // 2, 2)
    patches = patches.transpose(0, 2, 4, 1, 3, 5).reshape(
        b * (h // 2) * (w // 2), c * 4)
    lat = jnp.dot(patches, params["w_vae"]) + params["b_vae"]
    latents = lat.reshape(b, h // 2, w // 2, C_LAT).transpose(0, 3, 1, 2)
    latents = latents * SCALING                                   # (B,C,H,W)

    # ---- text encoder: embedding lookup + linear, masked --------------------
    # TODO(synk): real CLIP text encoder replaced by embedding + linear.
    emb = jnp.take(params["tok_emb"], input_ids, axis=0)          # (B,S,D)
    txt = jnp.dot(emb, params["w_txt"]) + params["b_txt"]         # (B,S,D)
    mask = attention_mask.astype(jnp.float32)
    txt = txt * mask[..., None]

    # ---- scheduler: t = arange(500, 501, 100) repeated per image ------------
    ts = jnp.full((b,), 500, dtype=jnp.int32)
    ac = params["alphas_cumprod"][ts]                              # (B,)
    sqrt_ac = jnp.sqrt(ac)
    sqrt_1mac = jnp.sqrt(1.0 - ac)

    # ---- unet conditioning (time embedding + pooled text) -------------------
    pooled = txt.sum(1) / jnp.maximum(mask.sum(1, keepdims=True), 1.0)  # (B,D)
    ctx = jnp.dot(pooled, params["w_ctx"]) + params["b_ctx"]       # (B,C_LAT)
    freqs = jnp.exp(-jnp.arange(F_TIME, dtype=jnp.float32)
                    * (jnp.log(10000.0) / F_TIME))
    targ = ts.astype(jnp.float32)[:, None] * freqs[None, :]
    t_feat = jnp.concatenate([jnp.sin(targ), jnp.cos(targ)], axis=-1)
    temb = jnp.dot(t_feat, params["w_time"]) + params["b_time"]    # (B,C_LAT)
    cond = ctx + temb                                              # (B,C_LAT)

    # ---- pack everything into the lane-dense (C, B*HW) layout ---------------
    # all_noise[t] is gathered ONCE here (no per-sample re-DMA of the bank).
    noise_sel = jnp.take(params["all_noise"], ts, axis=0)          # (B,C,H,W)
    noise_packed = noise_sel.reshape(b, C_LAT, HW_LAT).transpose(
        1, 0, 2).reshape(C_LAT, b * HW_LAT)
    lat_packed = latents.reshape(b, C_LAT, HW_LAT).transpose(
        1, 0, 2).reshape(C_LAT, b * HW_LAT)
    sab = jnp.broadcast_to(sqrt_ac[:, None], (b, HW_LAT)).reshape(1, b * HW_LAT)
    s1m = jnp.broadcast_to(sqrt_1mac[:, None], (b, HW_LAT)).reshape(
        1, b * HW_LAT)
    cond_packed = jnp.broadcast_to(
        cond.T[:, :, None], (C_LAT, b, HW_LAT)).reshape(C_LAT, b * HW_LAT)
    seg_mask = (jnp.arange(b * HW_LAT, dtype=jnp.int32)[:, None] // HW_LAT
                == jnp.arange(b, dtype=jnp.int32)[None, :]).astype(jnp.float32)

    # ---- fused noising -> synthetic unet -> per-sample MSE ------------------
    # TODO(synk): real SD UNet (resnet blocks / cross-attention) is replaced by
    # a synthetic conditioned 1x1-conv stack; dataflow & shapes are preserved.
    return fused_noise_unet_mse(lat_packed, noise_packed, sab, s1m,
                                cond_packed, params["w_u1"], params["w_u2"],
                                seg_mask)


# --------------------------------- main ---------------------------------------
if __name__ == "__main__":
    key = jax.random.PRNGKey(0)
    k_img, k_ids = jax.random.split(key)
    images = jax.random.normal(k_img, (B, C_IMG, H_IMG, W_IMG), jnp.float32)
    input_ids = jax.random.randint(k_ids, (B, SEQ), 0, VOCAB, dtype=jnp.int32)
    attention_mask = jnp.ones((B, SEQ), dtype=jnp.int32)

    params = init_params(jax.random.PRNGKey(1))

    fwd = jax.jit(zero_shot_forward)
    loss = fwd(params, images, input_ids, attention_mask)
    loss = jax.block_until_ready(loss)
    assert loss.shape == (B,)
    print("KERNEL_OK")
</pallas_src>

<mosaic_0001>
module attributes {stable_mosaic.version = 11 : i64} {
  func.func @_fused_kernel(%arg0: memref<4x128xf32, #tpu.memory_space<vmem>>, %arg1: memref<4x128xf32, #tpu.memory_space<vmem>>, %arg2: memref<1x128xf32, #tpu.memory_space<vmem>>, %arg3: memref<1x128xf32, #tpu.memory_space<vmem>>, %arg4: memref<4x128xf32, #tpu.memory_space<vmem>>, %arg5: memref<4x4xf32, #tpu.memory_space<vmem>>, %arg6: memref<4x4xf32, #tpu.memory_space<vmem>>, %arg7: memref<128x2xf32, #tpu.memory_space<vmem>>, %arg8: memref<1x2xf32, #tpu.memory_space<vmem>>) attributes {dimension_semantics = [], scalar_prefetch = 0 : i64, scratch_operands = 0 : i64, tpu.core_type = #tpu.core_type<tc>} {
    %c0 = arith.constant 0 : index
    %c0_0 = arith.constant 0 : index
    %0 = vector.load %arg0[%c0, %c0_0] : memref<4x128xf32, #tpu.memory_space<vmem>>, vector<4x128xf32>
    %c0_1 = arith.constant 0 : index
    %c0_2 = arith.constant 0 : index
    %1 = vector.load %arg1[%c0_1, %c0_2] : memref<4x128xf32, #tpu.memory_space<vmem>>, vector<4x128xf32>
    %c0_3 = arith.constant 0 : index
    %c0_4 = arith.constant 0 : index
    %2 = vector.load %arg2[%c0_3, %c0_4] : memref<1x128xf32, #tpu.memory_space<vmem>>, vector<1x128xf32>
    %3 = vector.broadcast %2 : vector<1x128xf32> to vector<4x128xf32>
    %4 = arith.mulf %0, %3 : vector<4x128xf32>
    %c0_5 = arith.constant 0 : index
    %c0_6 = arith.constant 0 : index
    %5 = vector.load %arg3[%c0_5, %c0_6] : memref<1x128xf32, #tpu.memory_space<vmem>>, vector<1x128xf32>
    %6 = vector.broadcast %5 : vector<1x128xf32> to vector<4x128xf32>
    %7 = arith.mulf %1, %6 : vector<4x128xf32>
    %8 = arith.addf %4, %7 : vector<4x128xf32>
    %c0_7 = arith.constant 0 : index
    %c0_8 = arith.constant 0 : index
    %9 = vector.load %arg5[%c0_7, %c0_8] : memref<4x4xf32, #tpu.memory_space<vmem>>, vector<4x4xf32>
    %cst = arith.constant dense<0.000000e+00> : vector<4x128xf32>
    %10 = tpu.matmul %9, %8, %cst {dimension_numbers = #tpu.dot_dimension_numbers<[1], [0], [0], [1], [0, 0, 1, 1], [], []>} : vector<4x4xf32>, vector<4x128xf32>, vector<4x128xf32> -> vector<4x128xf32>
    %c0_9 = arith.constant 0 : index
    %c0_10 = arith.constant 0 : index
    %11 = vector.load %arg4[%c0_9, %c0_10] : memref<4x128xf32, #tpu.memory_space<vmem>>, vector<4x128xf32>
    %12 = arith.addf %10, %11 : vector<4x128xf32>
    %13 = arith.negf %12 : vector<4x128xf32>
    %14 = math.exp %13 : vector<4x128xf32>
    %cst_11 = arith.constant 1.000000e+00 : f32
    %15 = vector.broadcast %cst_11 : f32 to vector<4x128xf32>
    %16 = arith.addf %15, %14 : vector<4x128xf32>
    %17 = arith.divf %15, %16 : vector<4x128xf32>
    %18 = arith.mulf %12, %17 : vector<4x128xf32>
    %c0_12 = arith.constant 0 : index
    %c0_13 = arith.constant 0 : index
    %19 = vector.load %arg6[%c0_12, %c0_13] : memref<4x4xf32, #tpu.memory_space<vmem>>, vector<4x4xf32>
    %cst_14 = arith.constant dense<0.000000e+00> : vector<4x128xf32>
    %20 = tpu.matmul %19, %18, %cst_14 {dimension_numbers = #tpu.dot_dimension_numbers<[1], [0], [0], [1], [0, 0, 1, 1], [], []>} : vector<4x4xf32>, vector<4x128xf32>, vector<4x128xf32> -> vector<4x128xf32>
    %21 = arith.subf %20, %1 : vector<4x128xf32>
    %22 = arith.mulf %21, %21 : vector<4x128xf32>
    %cst_15 = arith.constant dense<0.000000e+00> : vector<128xf32>
    %23 = vector.multi_reduction <add>, %22, %cst_15 [0] : vector<4x128xf32> to vector<128xf32>
    %24 = vector.shape_cast %23 : vector<128xf32> to vector<1x128xf32>
    %c0_16 = arith.constant 0 : index
    %c0_17 = arith.constant 0 : index
    %25 = vector.load %arg7[%c0_16, %c0_17] : memref<128x2xf32, #tpu.memory_space<vmem>>, vector<128x2xf32>
    %cst_18 = arith.constant dense<0.000000e+00> : vector<1x2xf32>
    %26 = tpu.matmul %24, %25, %cst_18 {dimension_numbers = #tpu.dot_dimension_numbers<[1], [0], [0], [1], [0, 0, 1, 1], [], []>} : vector<1x128xf32>, vector<128x2xf32>, vector<1x2xf32> -> vector<1x2xf32>
    %cst_19 = arith.constant 3.906250e-03 : f32
    %27 = vector.broadcast %cst_19 : f32 to vector<1x2xf32>
    %28 = arith.mulf %26, %27 : vector<1x2xf32>
    %c0_20 = arith.constant 0 : index
    %c0_21 = arith.constant 0 : index
    %29 = vector.load %arg8[%c0_20, %c0_21] : memref<1x2xf32, #tpu.memory_space<vmem>>, vector<1x2xf32>
    tpu.vector_store %arg8[%c0_20, %c0_21], %28 {strides = array<i32>} : memref<1x2xf32, #tpu.memory_space<vmem>>, vector<1x2xf32>,
    return
  }
}

</mosaic_0001>

<bundles_post_ra>
// kernel: zero_shot_forward.1
= control target key start
LH: loop header
LB: loop body
LE: loop exit
PB: predicated region body
PF: predicated region fallthrough
CT: control target
= control target key end

     0   :  { %v454_v2 = vmov 0.0   ;;  %vm455_vm0 = vmmov 0   ;;  %s593_s0 = inlined_call_operand.vmem [shape: f32[4,128], index: 0, kind: input, shape index: {}]   ;;  %s594_s1 = inlined_call_operand.vmem [shape: f32[4,128], index: 1, kind: input, shape index: {}]   ;;  %s595_s2 = inlined_call_operand.vmem [shape: f32[1,128], index: 2, kind: input, shape index: {}]   ;;  %s596_s3 = inlined_call_operand.vmem [shape: f32[1,128], index: 3, kind: input, shape index: {}]   ;;  %s597_s4 = inlined_call_operand.vmem [shape: f32[4,128], index: 4, kind: input, shape index: {}]   ;;  %s598_s5 = inlined_call_operand.vmem [shape: f32[4,4], index: 5, kind: input, shape index: {}]   ;;  %s599_s6 = inlined_call_operand.vmem [shape: f32[4,4], index: 6, kind: input, shape index: {}]   ;;  %s600_s7 = inlined_call_operand.vmem [shape: f32[128,2], index: 7, kind: input, shape index: {}]   ;;  %s601_s8 = inlined_call_operand.hbm [shape: f32[1,2], index: 8, kind: output, shape index: {}]  }
   0x1   :  { %v30_v0 = vld [vmem:[%s593_s0] sm:$0xf]  ;;  %353 = vmatprep.subr.mxu1 %v454_v2  ;;  %355 = vmatprep.mubr.msk.f32.mxu1 %vm455_vm0, %v454_v2 }
   0x2   :  { %v509_v1 = vld [vmem:[%s594_s1] sm:$0xf]  ;;  %395 = vmatprep.mubr.msk.f32.mxu0 %vm455_vm0, %v454_v2 }
   0x3   :  { %v325_v3 = vld [vmem:[%s595_s2] ss:$0 sm:$0xff] }
   0x4   :  { %v326_v4 = vld [vmem:[%s596_s3] ss:$0 sm:$0xff]  ;;  %v39_v5 = vmul.f32 %v325_v3, %v30_v0 }
   0x5   :  { %v47_v6 = vmul.f32 %v326_v4, %v509_v1 }
   0x6   :  { %13 = vsyncpa [#allocation3], 0  ;;  %vm55_vm1 = vcmask 1043456   ;;  %v49_v8 = vld [vmem:[%s598_s5] sm:$0xf]  ;;  %vm51_vm2 = vcmask 31744  }
   0x7   :  { %v48_v7 = vadd.f32 %v47_v6, %v39_v5  ;;  %v222_v9 = vld [vmem:[%s600_s7] sm:$0xff]  ;;  %v223_v10 = vld [vmem:[%s600_s7 + $0x8] sm:$0xff]  ;;  %v224_v11 = vld [vmem:[%s600_s7 + $0x10] sm:$0xff]  ;;  %v456_v12 = vmov 0.0|0.0   ;;  %s457_s17 = smov [#allocation2]   ;;  %vm309_vm3 = vcmask 8192  }
   0x8   :  { %398 = vmatprep.subr.bf16.mxu0 %v456_v12  ;;  %v399_v13 = vpack.c.bf16 %v223_v10, %v222_v9  ;;  %v225_v14 = vld [vmem:[%s600_s7 + $0x18] sm:$0xff]  ;;  %v226_v16 = vld [vmem:[%s600_s7 + $0x20] sm:$0xff]  ;;  %v227_v17 = vld [vmem:[%s600_s7 + $0x28] sm:$0xff] }
   0x9   :  { %354 = vmatpush3.msk.msra.mxu1 %vm55_vm1, %v48_v7  ;;  %v402_v15 = vpack.c.bf16 %v225_v14, %v224_v11  ;;  %v405_v18 = vpack.c.bf16 %v227_v17, %v226_v16  ;;  %v228_v19 = vld [vmem:[%s600_s7 + $0x30] sm:$0xff]  ;;  %v229_v20 = vld [vmem:[%s600_s7 + $0x38] sm:$0xff]  ;;  %v50_v22 = vld [vmem:[%s597_s4] sm:$0xf] }
   0xa   :  { %356 = vmatmul.mubr.msk.f32.vlgmr.msra.gmra.mrb[0].mxu1 %vm51_vm2, %v49_v8  ;;  %358 = vmatprep.subr.mxu1 %v454_v2  ;;  %v408_v21 = vpack.c.bf16 %v229_v20, %v228_v19  ;;  %v136_v31 = vld [vmem:[%s599_s6] sm:$0xf]  ;;  %v231_v33 = vld [vmem:[%s600_s7 + $0x48] sm:$0xff]  ;;  %v232_v35 = vld [vmem:[%s600_s7 + $0x50] sm:$0xff] }
   0xb   :  { %360 = vmatprep.mubr.msk.f32.mxu1 %vm455_vm0, %v454_v2  ;;  %400 = vmatpush3.bf16.msra.mxu0 %v399_v13  ;;  %v230_v32 = vld [vmem:[%s600_s7 + $0x40] sm:$0xff]  ;;  %v233_v36 = vld [vmem:[%s600_s7 + $0x58] sm:$0xff]  ;;  %v235_v39 = vld [vmem:[%s600_s7 + $0x68] sm:$0xff] }
   0xc   :  { %401 = vmatprep.subr.bf16.mxu0 %v456_v12  ;;  %v411_v34 = vpack.c.bf16 %v231_v33, %v230_v32  ;;  %v414_v37 = vpack.c.bf16 %v233_v36, %v232_v35  ;;  %v234_v38 = vld [vmem:[%s600_s7 + $0x60] sm:$0xff]  ;;  %v236_v41 = vld [vmem:[%s600_s7 + $0x70] sm:$0xff]  ;;  %v237_v42 = vld [vmem:[%s600_s7 + $0x78] sm:$0xff]  ;;  %s317_s7 = sshll.u32 %s457_s17, 4  ;;  %s318_s7 = int_to_ptr.vmem [resolvable:$true] %s317_s7 }
   0xd   :  { %v417_v40 = vpack.c.bf16 %v235_v39, %v234_v38  ;;  %v420_v43 = vpack.c.bf16 %v237_v42, %v236_v41  ;;  %s430_s18 = scalar_lea.vmem %s318_s7, 16  ;;  %s434_s19 = scalar_lea.vmem %s318_s7, 32 }
   0xe   :  { %p431_p0 = scmp.ne.s32.totalorder %s318_s7, %s430_s18  ;;  %p435_p1 = scmp.lt.s32.totalorder %s318_s7, %s318_s7 }
   0xf   :  { %403 = vmatpush3.bf16.msra.mxu0 %v402_v15  ;;  %p436_p2 = scmp.lt.s32.totalorder %s434_s19, %s430_s18 }
  0x10   :  { %404 = vmatprep.subr.bf16.mxu0 %v456_v12 }
  0x11   :  { %p437_p3 = por %p436_p2, %p435_p1 }
  0x13   :  { %406 = vmatpush3.bf16.msra.mxu0 %v405_v18  ;;  %p438_p4 = pnand %p437_p3, %p431_p0 }
  0x14   :  { %407 = vmatprep.subr.bf16.mxu0 %v456_v12 }
  0x17   :  { %409 = vmatpush3.bf16.msra.mxu0 %v408_v21 }
  0x18   :  { %410 = vmatprep.subr.bf16.mxu0 %v456_v12 }
  0x1b   :  { %412 = vmatpush3.bf16.msra.mxu0 %v411_v34 }
  0x1c   :  { %413 = vmatprep.subr.bf16.mxu0 %v456_v12 }
  0x1f   :  { %415 = vmatpush3.bf16.msra.mxu0 %v414_v37 }
  0x20   :  { %416 = vmatprep.subr.bf16.mxu0 %v456_v12 }
  0x23   :  { %418 = vmatpush3.bf16.msra.mxu0 %v417_v40 }
  0x24   :  { %419 = vmatprep.subr.bf16.mxu0 %v456_v12 }
  0x27   :  { %421 = vmatpush3.bf16.msra.mxu0 %v420_v43 }
  0xdd   :  { %v125_v23 = vpop.f32.mrb[0].mxu1 }
  0xde   :  { %v126_v24 = vadd.f32 %v125_v23, %v50_v22  ;;  %v357_v25 = vpop.f32.mrb[1].mxu1 }
  0xe0   :  { %v329_v26 = vmul.f32 -1.442695, %v126_v24 }
  0xe2   :  { %426 = vpow2.f32 %v329_v26 }
  0xec   :  { %v427_v27 = vpop.eup %426 }
  0xed   :  { %v132_v28 = vadd.f32 1.0, %v427_v27 }
  0xef   :  { %428 = vrcp.f32 %v132_v28 }
  0xf9   :  { %v429_v29 = vpop.eup %428 }
  0xfa   :  { %v135_v30 = vmul.f32 %v429_v29, %v126_v24 }
  0xfc   :  { %359 = vmatpush3.msk.msra.mxu1 %vm55_vm1, %v135_v30 }
  0xfd   :  { %361 = vmatmul.mubr.msk.f32.vlgmr.msra.gmra.mrb[2].mxu1 %vm51_vm2, %v136_v31 }
 0x1d0   :  { %v209_v44 = vpop.f32.mrb[2].mxu1 }
 0x1d1   :  { %v213_v45 = vsub.f32 %v209_v44, %v509_v1  ;;  %v362_v46 = vpop.f32.mrb[3].mxu1 }
 0x1d3   :  { %v214_v47 = vmul.f32 %v213_v45, %v213_v45 }
 0x1d5   :  { %v215_v48 = vsel %vm55_vm1, %v214_v47, 0.0 }
 0x1d6   :  { %v216_v49 = vrot.slane %v215_v48, 4 }
 0x1d8   :  { %v217_v50 = vadd.f32 %v216_v49, %v215_v48 }
 0x1da   :  { %v218_v51 = vrot.slane %v217_v50, 2 }
 0x1dc   :  { %v219_v52 = vadd.f32 %v218_v51, %v217_v50 }
 0x1de   :  { %v220_v53 = vrot.slane %v219_v52, 1 }
 0x1e0   :  { %v221_v54 = vadd.f32 %v220_v53, %v219_v52 }
 0x1e2   :  { %396 = vmatmul.mubr.f32.vlgmr.msra.gmra.mrb[0].mxu0 %v221_v54 }
 0x2b5   :  { %v304_v55 = vpop.f32.mrb[0].mxu0 }
 0x2b6   :  { %v308_v56 = vmul.f32 0.00390625, %v304_v55  ;;  %v397_v57 = vpop.f32.mrb[1].mxu0 }
 0x2b8   :  { %310 = vst.msk [vmem:[#allocation2] sm:$0x1] %vm309_vm3, %v308_v56 }
 0x2b9   :  { %441 = shalt.err (!%p438_p4)
}
 0x2ba   :  { %s442_s22 = scalar_lea.hbm %s601_s8, 16 }
 0x2bb   :  { %p443_p5 = scmp.ne.s32.totalorder %s601_s8, %s442_s22  ;;  %p446_p6 = scmp.lt.u32.totalorder %s442_s22, %s601_s8 }
 0x2bd   :  { %p448_p7 = pnand %p446_p6, %p443_p5 }
 0x2bf   :  { %451 = shalt.err (!%p448_p7)
}
 0x2c0   :  { %320 = dma.vmem_to_hbm [thread:$0]  %s318_s7, 16, %s601_s8, [#allocation3]  }
 0x2c1   :  { %452 = dma.done.wait [#allocation3], 16  }
 0x2c2   :  { %453 = vsyncadd [#allocation3], 4294967280 }
 0x2c3   :  { %324 = vsyncpa [#allocation3], 1 }

</bundles_post_ra>
